<compile_context>
chip_gen: v6e
topology: v6e:2x2x1
jax: 0.10.0
libtpu: 0.0.40
codegen_flags: <defaults>
</compile_context>

<pallas_src>
import functools

import jax
import jax.numpy as jnp
from jax.experimental import pallas as pl
from jax.experimental.pallas import tpu as pltpu

_HALO = 128  # lane-dense halo tile (>= K-1 for any sane kernel size)


def _round_up(x, m):
    return ((x + m - 1) // m) * m


def _masked_conv1d_kernel(x_ref, xh_ref, w_ref, b_ref, o_ref, *, K, Lt):
    # x_ref : (1, C_in_p, Lt)        current input tile (padded coordinates)
    # xh_ref: (1, C_in_p, _HALO)     halo tile starting right after this tile
    # w_ref : (C_out_t, K*C_in_p)    mask-fused, tap-major reshaped weights
    # b_ref : (C_out_t, 1)           bias (f32)
    # o_ref : (1, C_out_t, Lt)       output tile
    x0 = x_ref[0]                                       # (C_in_p, Lt)
    xh = xh_ref[0]                                      # (C_in_p, _HALO)
    xx = jnp.concatenate([x0, xh], axis=-1)             # (C_in_p, Lt + _HALO)

    # K shifted copies of the window (static lane slices -> XLU lane shifts).
    taps = [xx[:, k:k + Lt] for k in range(K)]
    im2col = jnp.concatenate(taps, axis=0)              # (K*C_in_p, Lt)

    # Single fat MXU matmul, contraction = K*C_in_p, f32 accumulation.
    acc = jnp.dot(w_ref[...], im2col, preferred_element_type=jnp.float32)
    o_ref[0] = (acc + b_ref[...]).astype(o_ref.dtype)


def efficient_masked_conv1d(x, weight, bias=None, mask=None, padding_mode="zeros",
                            compute_dtype=None, l_tile=None):
    """Forward pass of EfficientMaskedConv1d / MaskedConv1d.

    x: (N, C_in, L); weight: (C_out, C_in, K); bias: (C_out,) or None;
    mask: (C_out, C_in) or None (None => plain 'same'-padded conv, matching the
    nn.Conv1d(padding='same') branch — both use left = (K-1)//2, extra on right).
    compute_dtype: optional matmul-operand dtype (e.g. jnp.bfloat16); the
    accumulation stays f32 and the output keeps x.dtype.
    """
    if padding_mode != "zeros":
        # TODO(synk): only 'zeros' (constant) padding is implemented; 'reflect'/
        #             'replicate'/'circular' need different halo handling.
        raise NotImplementedError("only padding_mode='zeros' is supported")

    N, C_in, L = x.shape
    C_out, _, K = weight.shape
    assert K - 1 <= _HALO, "kernel taps must fit inside the halo tile"
    out_dtype = x.dtype
    op_dtype = compute_dtype if compute_dtype is not None else x.dtype
    isz = jnp.dtype(op_dtype).itemsize

    # Pad C_in up to the native sublane packing so the in-kernel sublane
    # concatenation (im2col stacking) is tile-aligned.  Real models have
    # C_in % 8 == 0 so this is a no-op there.
    pack = 8 * (4 // isz)                    # 8 for f32, 16 for bf16
    C_in_p = _round_up(C_in, pack)

    # ---- hoisted out of the kernel: mask multiply + tap-major weight reshape.
    wm = weight if mask is None else weight * mask[:, :, None].astype(weight.dtype)
    wm_p = jnp.pad(wm, ((0, 0), (0, C_in_p - C_in), (0, 0)))
    # im2col rows are tap-major: row = k*C_in_p + c
    w2 = jnp.transpose(wm_p, (0, 2, 1)).reshape(C_out, K * C_in_p)

    b = bias if bias is not None else jnp.zeros((C_out,), out_dtype)
    b2 = b.reshape(C_out, 1).astype(jnp.float32)

    # ---- tile selection (lane-dense L tiles, optional C_out tiling) ----------
    if l_tile is not None:
        assert l_tile % 128 == 0 and l_tile >= 128
        Lt = l_tile
    else:
        Lt = max(128, min(512, _round_up(L, 128)))
        while Lt > 128 and C_in_p * Lt * isz > (4 << 20):   # keep x tiles modest (v7x)
            Lt -= 128
    if C_out % 128 == 0 and C_out > 128:
        co_t = 256 if C_out % 256 == 0 else 128
    else:
        co_t = C_out
    n_lt = pl.cdiv(L, Lt)
    n_co = C_out // co_t
    L_pad = n_lt * Lt
    lt_blocks = Lt // _HALO        # halo-block stride per L-tile

    # ---- 'same' padding (extra on the right), plus right-fill so the halo
    #      block after the last tile always exists.  Done once in HBM.
    # TODO(synk): the halo could be handled fully in-kernel (masked edge loads)
    #             to avoid this extra padded copy of x in HBM.
    left = (K - 1) // 2
    padded_len = n_lt * Lt + _HALO
    xp = jnp.pad(x, ((0, 0), (0, C_in_p - C_in), (left, padded_len - L - left)))

    if compute_dtype is not None:
        xp = xp.astype(compute_dtype)
        w2 = w2.astype(compute_dtype)

    kernel = functools.partial(_masked_conv1d_kernel, K=K, Lt=Lt)

    flops = 2 * N * C_out * K * C_in_p * L_pad
    bytes_accessed = (N * C_in_p * padded_len * isz              # x (once)
                      + N * n_lt * C_in_p * _HALO * isz          # halo re-reads
                      + N * C_out * L_pad * jnp.dtype(out_dtype).itemsize
                      + n_lt * N * w2.size * w2.dtype.itemsize + b2.size * 4)

    # Per-step VMEM footprint (x2 for double buffering) + in-kernel temporaries;
    # only raise the scoped VMEM limit when the default might not cover it.
    step_bytes = (2 * (C_in_p * (Lt + _HALO) * isz
                       + co_t * Lt * jnp.dtype(out_dtype).itemsize
                       + co_t * K * C_in_p * isz + co_t * 4)
                  + 2 * K * C_in_p * Lt * isz)                   # xx + im2col temps
    vmem_limit = None
    if step_bytes * 2 > (16 << 20):
        vmem_limit = int(min(step_bytes * 3, 64 << 20))

    out = pl.pallas_call(
        kernel,
        out_shape=jax.ShapeDtypeStruct((N, C_out, L_pad), out_dtype),
        grid_spec=pltpu.PrefetchScalarGridSpec(
            num_scalar_prefetch=0,
            grid=(N, n_co, n_lt),
            in_specs=[
                pl.BlockSpec((1, C_in_p, Lt), lambda n, co, j: (n, 0, j)),
                pl.BlockSpec((1, C_in_p, _HALO),
                             lambda n, co, j: (n, 0, (j + 1) * lt_blocks)),
                pl.BlockSpec((co_t, K * C_in_p), lambda n, co, j: (co, 0)),
                pl.BlockSpec((co_t, 1), lambda n, co, j: (co, 0)),
            ],
            out_specs=pl.BlockSpec((1, co_t, Lt), lambda n, co, j: (n, co, j)),
        ),
        compiler_params=pltpu.CompilerParams(
            dimension_semantics=("parallel", "parallel", "parallel"),
            vmem_limit_bytes=vmem_limit),
        cost_estimate=pl.CostEstimate(flops=flops, transcendentals=0,
                                      bytes_accessed=bytes_accessed),
    )(xp, xp, w2, b2)

    return out[:, :, :L] if L_pad != L else out


def _reference(x, weight, bias, mask):
    """Plain-JAX reference mirroring MaskedConv1d.forward / Conv1d(padding='same')."""
    N, C_in, L = x.shape
    C_out, _, K = weight.shape
    left = (K - 1) // 2
    xp = jnp.pad(x, ((0, 0), (0, 0), (left, (K - 1) - left)))
    wm = weight * mask[:, :, None]
    windows = jnp.stack([xp[:, :, k:k + L] for k in range(K)], axis=-1)  # (N,Cin,L,K)
    return jnp.einsum('nclk,ock->nol', windows, wm) + bias[None, :, None]


if __name__ == "__main__":
    # ---- test 1: module-consistent small shapes -------------------------------
    N, C_in, C_out, L, K = 2, 4, 6, 16, 3
    key = jax.random.PRNGKey(0)
    k_x, k_w, k_b, k_m = jax.random.split(key, 4)
    init_k = (1.0 / (C_in * K)) ** 0.5
    x = jax.random.normal(k_x, (N, C_in, L), dtype=jnp.float32)
    weight = jax.random.uniform(k_w, (C_out, C_in, K), dtype=jnp.float32,
                                minval=-init_k, maxval=init_k)
    bias = jax.random.uniform(k_b, (C_out,), dtype=jnp.float32,
                              minval=-init_k, maxval=init_k)
    mask = (jax.random.uniform(k_m, (C_out, C_in)) > 0.3).astype(jnp.float32)

    ref = _reference(x, weight, bias, mask)
    out = jax.block_until_ready(efficient_masked_conv1d(x, weight, bias, mask))
    assert out.shape == (N, C_out, L)
    assert jnp.allclose(out, ref, atol=1e-4, rtol=1e-4), "mismatch vs reference"

    # mask=None branch (plain 'same'-padded conv, like the nn.Conv1d path).
    out_nm = jax.block_until_ready(efficient_masked_conv1d(x, weight, bias, None))
    ref_nm = _reference(x, weight, bias, jnp.ones((C_out, C_in), jnp.float32))
    assert jnp.allclose(out_nm, ref_nm, atol=1e-4, rtol=1e-4)

    # bf16 operands / f32 accumulation path (v6e/v7x MXU + HBM roofline).
    out_bf = jax.block_until_ready(
        efficient_masked_conv1d(x, weight, bias, mask, compute_dtype=jnp.bfloat16))
    assert jnp.allclose(out_bf, ref, atol=1e-1, rtol=1e-1)

    # ---- test 2: multi L-tile grid (halo across tiles) + even kernel size -----
    N2, C_in2, C_out2, L2, K2 = 2, 8, 16, 256, 4
    k_x2, k_w2, k_b2, k_m2 = jax.random.split(jax.random.PRNGKey(1), 4)
    init_k2 = (1.0 / (C_in2 * K2)) ** 0.5
    x2 = jax.random.normal(k_x2, (N2, C_in2, L2), dtype=jnp.float32)
    w2_ = jax.random.uniform(k_w2, (C_out2, C_in2, K2), dtype=jnp.float32,
                             minval=-init_k2, maxval=init_k2)
    b2_ = jax.random.uniform(k_b2, (C_out2,), dtype=jnp.float32,
                             minval=-init_k2, maxval=init_k2)
    m2_ = (jax.random.uniform(k_m2, (C_out2, C_in2)) > 0.3).astype(jnp.float32)
    out2 = jax.block_until_ready(
        efficient_masked_conv1d(x2, w2_, b2_, m2_, l_tile=128))   # 2 L-tiles
    ref2 = _reference(x2, w2_, b2_, m2_)
    assert out2.shape == (N2, C_out2, L2)
    assert jnp.allclose(out2, ref2, atol=1e-4, rtol=1e-4), "multi-tile mismatch"

    print("KERNEL_OK")
</pallas_src>

<mosaic_0001>
module attributes {stable_mosaic.version = 11 : i64} {
  func.func @_masked_conv1d_kernel(%arg0: i32, %arg1: i32, %arg2: i32, %arg3: memref<1x8x128xf32, #tpu.memory_space<vmem>>, %arg4: memref<1x8x128xf32, #tpu.memory_space<vmem>>, %arg5: memref<6x24xf32, #tpu.memory_space<vmem>>, %arg6: memref<6x1xf32, #tpu.memory_space<vmem>>, %arg7: memref<1x6x128xf32, #tpu.memory_space<vmem>>) attributes {dimension_semantics = [#tpu.dimension_semantics<parallel>, #tpu.dimension_semantics<parallel>, #tpu.dimension_semantics<parallel>], iteration_bounds = array<i64: 2, 1, 1>, scalar_prefetch = 0 : i64, scratch_operands = 0 : i64, tpu.core_type = #tpu.core_type<tc>, window_params = [{transform_indices = @transform_0, window_bounds = array<i64: 1, 8, 128>}, {transform_indices = @transform_1, window_bounds = array<i64: 1, 8, 128>}, {transform_indices = @transform_2, window_bounds = array<i64: 6, 24>}, {transform_indices = @transform_3, window_bounds = array<i64: 6, 1>}, {transform_indices = @transform_4, window_bounds = array<i64: 1, 6, 128>}]} {
    %c0 = arith.constant 0 : index
    %c0_0 = arith.constant 0 : index
    %c0_1 = arith.constant 0 : index
    %0 = vector.load %arg3[%c0, %c0_0, %c0_1] : memref<1x8x128xf32, #tpu.memory_space<vmem>>, vector<1x8x128xf32>
    %1 = vector.shape_cast %0 : vector<1x8x128xf32> to vector<8x128xf32>
    %c0_2 = arith.constant 0 : index
    %c0_3 = arith.constant 0 : index
    %c0_4 = arith.constant 0 : index
    %2 = vector.load %arg4[%c0_2, %c0_3, %c0_4] : memref<1x8x128xf32, #tpu.memory_space<vmem>>, vector<1x8x128xf32>
    %3 = vector.shape_cast %2 : vector<1x8x128xf32> to vector<8x128xf32>
    %4 = tpu.concatenate %1, %3 in 1 : vector<8x128xf32>, vector<8x128xf32> -> vector<8x256xf32>
    %5 = vector.extract_strided_slice %4 {offsets = [0, 0], sizes = [8, 128], strides = [1, 1]} : vector<8x256xf32> to vector<8x128xf32>
    %6 = vector.extract_strided_slice %4 {offsets = [0, 1], sizes = [8, 128], strides = [1, 1]} : vector<8x256xf32> to vector<8x128xf32>
    %7 = vector.extract_strided_slice %4 {offsets = [0, 2], sizes = [8, 128], strides = [1, 1]} : vector<8x256xf32> to vector<8x128xf32>
    %8 = tpu.concatenate %5, %6, %7 in 0 : vector<8x128xf32>, vector<8x128xf32>, vector<8x128xf32> -> vector<24x128xf32>
    %c0_5 = arith.constant 0 : index
    %c0_6 = arith.constant 0 : index
    %9 = vector.load %arg5[%c0_5, %c0_6] : memref<6x24xf32, #tpu.memory_space<vmem>>, vector<6x24xf32>
    %cst = arith.constant dense<0.000000e+00> : vector<6x128xf32>
    %10 = tpu.matmul %9, %8, %cst {dimension_numbers = #tpu.dot_dimension_numbers<[1], [0], [0], [1], [0, 0, 1, 1], [], []>} : vector<6x24xf32>, vector<24x128xf32>, vector<6x128xf32> -> vector<6x128xf32>
    %c0_7 = arith.constant 0 : index
    %c0_8 = arith.constant 0 : index
    %11 = vector.load %arg6[%c0_7, %c0_8] : memref<6x1xf32, #tpu.memory_space<vmem>>, vector<6x1xf32>
    %12 = vector.broadcast %11 : vector<6x1xf32> to vector<6x128xf32>
    %13 = arith.addf %10, %12 : vector<6x128xf32>
    %c0_9 = arith.constant 0 : index
    %c0_10 = arith.constant 0 : index
    %c0_11 = arith.constant 0 : index
    %14 = vector.load %arg7[%c0_9, %c0_10, %c0_11] : memref<1x6x128xf32, #tpu.memory_space<vmem>>, vector<1x6x128xf32>
    %15 = vector.shape_cast %14 : vector<1x6x128xf32> to vector<6x128xf32>
    %16 = vector.shape_cast %13 : vector<6x128xf32> to vector<1x6x128xf32>
    tpu.vector_store %arg7[%c0_9, %c0_10, %c0_11], %16 {strides = array<i32>} : memref<1x6x128xf32, #tpu.memory_space<vmem>>, vector<1x6x128xf32>,
    return
  }
  func.func @transform_0(%arg0: i32, %arg1: i32, %arg2: i32) -> (i32, i32, i32) {
    %c0_i32 = arith.constant 0 : i32
    %c0_i32_0 = arith.constant 0 : i32
    return %arg0, %c0_i32, %arg2 : i32, i32, i32
  }
  func.func @transform_1(%arg0: i32, %arg1: i32, %arg2: i32) -> (i32, i32, i32) {
    %c1_i32 = arith.constant 1 : i32
    %0 = arith.addi %arg2, %c1_i32 : i32
    %c1_i32_0 = arith.constant 1 : i32
    %1 = arith.muli %0, %c1_i32_0 : i32
    %c0_i32 = arith.constant 0 : i32
    %c0_i32_1 = arith.constant 0 : i32
    return %arg0, %c0_i32, %1 : i32, i32, i32
  }
  func.func @transform_2(%arg0: i32, %arg1: i32, %arg2: i32) -> (i32, i32) {
    %c0_i32 = arith.constant 0 : i32
    %c0_i32_0 = arith.constant 0 : i32
    return %arg1, %c0_i32 : i32, i32
  }
  func.func @transform_3(%arg0: i32, %arg1: i32, %arg2: i32) -> (i32, i32) {
    %c0_i32 = arith.constant 0 : i32
    %c0_i32_0 = arith.constant 0 : i32
    return %arg1, %c0_i32 : i32, i32
  }
  func.func @transform_4(%arg0: i32, %arg1: i32, %arg2: i32) -> (i32, i32, i32) {
    %c0_i32 = arith.constant 0 : i32
    return %arg0, %arg1, %arg2 : i32, i32, i32
  }
}

</mosaic_0001>

<bundles_post_ra>
// kernel: tpu_custom_call.1
= control target key start
LH: loop header
LB: loop body
LE: loop exit
PB: predicated region body
PF: predicated region fallthrough
CT: control target
= control target key end

     0   :  { %9 = vsyncpa [#allocation3], 0  ;;  %s962_s0 = inlined_call_operand.hbm [shape: f32[2,8,256], index: 0, kind: input, shape index: {}]   ;;  %s963_s1 = inlined_call_operand.hbm [shape: f32[2,8,256], index: 1, kind: input, shape index: {}]   ;;  %s964_s2 = inlined_call_operand.vmem [shape: f32[6,24], index: 2, kind: input, shape index: {}]   ;;  %s965_s3 = inlined_call_operand.vmem [shape: f32[6,1], index: 3, kind: input, shape index: {}]   ;;  %s966_s4 = inlined_call_operand.vmem [shape: f32[2,6,128], index: 4, kind: output, shape index: {}]  }
   0x1   :  { %11 = vsyncpa [#allocation3 + $0x1], 0 }
   0x2   :  { %12 = vsyncpa [#allocation5], 0 }
   0x3   :  { %14 = vsyncpa [#allocation5 + $0x1], 0  ;;  %s830_s15 = smov 0   ;;  %s832_s16 = smov 0  }
   0x4   :  { %s834_s17 = smov 0   ;;  %s836_s18 = smov 0  }
   0x5   :  { %s838_s19 = smov 0   ;;  %s840_s20 = smov 0  }
   0x6 LB: > { %s585_s21 = sadd.s32 4294967295, %s796_s20   ;;  %s39_s22 = sadd.s32 1, %s792_s19  ;;  %s796_s20 = sphi %s840_s20, %s20_s20   ;;  %s792_s19 = sphi %s838_s19, %s975_s19   ;;  %s788_s18 = sphi %s836_s18, %s974_s18   ;;  %s784_s17 = sphi %s834_s17, %s973_s17   ;;  %s780_s16 = sphi %s832_s16, %s972_s16   ;;  %s776_s15 = sphi %s830_s15, %s971_s15  }
   0x7   : > { %p41_p0 = scmp.ge.s32.totalorder %s39_s22, 2  ;;  %s48_s23 = sadd.s32 1, %s784_s17 }
   0x8   : > { %p55_p1 = scmp.ne.s32.totalorder %s784_s17, %s780_s16  ;;  %p56_p2 = scmp.eq.s32.totalorder %s796_s20, 0 }
   0x9   : > { %s977_s22 = smov (%p41_p0, %s39_s22), 0  ;;  %p61_p4 = scmp.ne.s32.totalorder %s780_s16, %s776_s15 }
   0xa   : > { %p866_p3 = por %p56_p2, %p55_p1  ;;  %s43_s25 = ssub.s32 %s792_s19, %s977_s22 }
   0xb   : > { %p62_p5 = scmp.eq.s32.totalorder %s585_s21, 0  ;;  %p46_p6 = scmp.eq.s32.totalorder %s43_s25, 0 }
   0xc   : > { %p630_p8 = scmp.lt.s32.totalorder %s796_s20, 2  ;;  %s882_s28 = sand.u32 1, %s784_s17  }
   0xd   : > { %p873_p7 = por %p62_p5, %p61_p4  ;;  %s604_s29 = sshll.u32 %s792_s19, 8 }
   0xe   : > { %s879_s27 = scalar_select %p46_p6, %s784_s17, %s48_s23  }
   0xf   : > { %s591_s30 = sshll.u32 %s882_s28, 3  ;;  %s222_s7 = scalar_lea.hbm %s962_s0, %s604_s29 }
  0x10   : > { %s215_s8 = scalar_lea.vmem [#allocation2], %s591_s30  ;;  %p891_p9 = pnand %p630_p8, %p866_p3 }
  0x11   : > { %s224_s9 = sshll.u32 %s215_s8, 4  ;;  %p597_p10 = scmp.ge.s32.totalorder %s796_s20, 1  ;;  %s225_s9 = int_to_ptr.vmem [resolvable:$true] %s224_s9 }
  0x12   : > { %p250_p11 = scmp.lt.s32.totalorder %s796_s20, 3  ;;  %s212_s11 = scalar_lea.sflag [#allocation3], %s882_s28 }
  0x13   : > { %p687_p12 = pneg %p891_p9  ;;  %s698_s12 = scalar_lea.vmem %s225_s9, 128 }
  0x14   : > { %p699_p13 = scmp.ne.s32.totalorder %s225_s9, %s698_s12  ;;  %s798_s13 = smov [#allocation2]  }
  0x15   : > { %s703_s14 = sshll.u32 %s798_s13, 4  ;;  %s704_s14 = int_to_ptr.vmem [resolvable:$false] %s703_s14 }
  0x16   : > { %p701_p0 = pnand %p699_p13, %p687_p12  ;;  %s705_s15 = scalar_lea.vmem %s704_s14, 256 }
  0x17   : > { %p706_p2 = scmp.lt.s32.totalorder %s225_s9, %s704_s14  ;;  %p707_p3 = scmp.lt.s32.totalorder %s705_s15, %s698_s12 }
  0x18   : > { %p702_p1 = pneg %p701_p0 }
  0x19   : > { %p708_p4 = por %p707_p3, %p706_p2 }
  0x1b   : > { %p709_p5 = pnand %p708_p4, %p702_p1 }
  0x1d   : > { %712 = shalt.err (!%p709_p5)
}
  0x1e   : > { %626 = dma.hbm_to_vmem [thread:$0]  (!%p891_p9), %s222_s7, 128, %s225_s9, %s212_s11  }
  0x1f   : > { %p909_p6 = pnand %p597_p10, %p250_p11  ;;  %s485_s25 = scalar_lea.hbm %s963_s1, %s604_s29 }
  0x20   : > { %s486_s5 = scalar_lea.hbm %s485_s25, 128  ;;  %s235_s6 = scalar_lea.vmem [#allocation4], %s591_s30 }
  0x21   : > { %s245_s8 = sshll.u32 %s235_s6, 4  ;;  %s232_s12 = scalar_lea.sflag [#allocation5], %s882_s28  ;;  %s246_s8 = int_to_ptr.vmem [resolvable:$true] %s245_s8 }
  0x22   : > { %s726_s13 = scalar_lea.vmem %s246_s8, 128  ;;  %s799_s7 = smov [#allocation4]  }
  0x23   : > { %p727_p8 = scmp.ne.s32.totalorder %s246_s8, %s726_s13  ;;  %s731_s9 = sshll.u32 %s799_s7, 4  ;;  %s732_s9 = int_to_ptr.vmem [resolvable:$false] %s731_s9 }
  0x24   : > { %s733_s11 = scalar_lea.vmem %s732_s9, 256  ;;  %p734_p10 = scmp.lt.s32.totalorder %s246_s8, %s732_s9 }
  0x25   : > { %p729_p13 = pnand %p727_p8, %p687_p12  ;;  %p735_p11 = scmp.lt.s32.totalorder %s733_s11, %s726_s13 }
  0x27   : > { %p730_p0 = pneg %p729_p13  ;;  %p736_p1 = por %p735_p11, %p734_p10 }
  0x29   : > { %p737_p2 = pnand %p736_p1, %p730_p0 }
  0x2b   : > { %740 = shalt.err (!%p737_p2)
}
  0x2c   : > { %629 = dma.hbm_to_vmem [thread:$0]  (!%p891_p9), %s486_s5, 128, %s246_s8, %s232_s12  }
  0x2d   : > { %254 = sbr.rel (%p909_p6) target bundleno = 377 (0x179), region = 36  ;;  %s256_s28 = sand.u32 (!%p909_p6), 1, %s780_s16  }
  0x2e   : > { %s598_s29 = sshll.u32 (!%p909_p6), %s256_s28, 3  ;;  %s257_s30 = scalar_lea.sflag (!%p909_p6), [#allocation3], %s256_s28 }
  0x2f   : > { %s260_s14 = scalar_lea.vmem (!%p909_p6), [#allocation2], %s598_s29 }
  0x32   : > { %767 = dma.done.wait (%p873_p7), %s257_s30, 128  }
  0x33   : > { %769 = vsyncadd (%p873_p7), %s257_s30, 4294967168  ;;  %s266_s15 = scalar_lea.sflag [#allocation5], %s256_s28  ;;  %s269_s23 = scalar_lea.vmem [#allocation4], %s598_s29 }
  0x34   : > { %771 = dma.done.wait (%p873_p7), %s266_s15, 128  }
  0x35   : > { %773 = vsyncadd (%p873_p7), %s266_s15, 4294967168  ;;  %v800_v0 = vmov 0.0   ;;  %vm801_vm0 = vmmov 0   ;;  %v802_v1 = vmov 0   ;;  %v331_v2 = vld [vmem:[%s260_s14] sm:$0xff]  ;;  %s803_s10 = smov 127  }
  0x36   : > { %610 = vmatprep.subr.mxu0 %v800_v0  ;;  %616 = vmatprep.mubr.msk.f32.mxu0 %vm801_vm0, %v800_v0  ;;  %s804_s21 = smov 126   ;;  %v332_v3 = vld [vmem:[%s269_s23] sm:$0xff]  ;;  %v350_v4 = vld [vmem:[%s965_s3] sm:$0x3f]  ;;  %vm346_vm1 = vcmask 1031168   ;;  %vm339_vm2 = vcmask 1039360  }
  0x37   : > { %684 = vset.pattern.permute.xlu0 %v802_v1  ;;  %335 = vrot.lane.b32.xlu1 %v331_v2, %s803_s10  ;;  %v349_v11 = vld [vmem:[%s964_s2] sm:$0x3f]  ;;  %vm356_vm3 = vcmask 195584   ;;  %p321_p7 = scmp.lt.s32.totalorder %s788_s18, 1 }
  0x38   : > { %342 = vrot.lane.b32.xlu0 %v331_v2, %s804_s21 }
  0x39   : > { %s979_s18 = smov (!%p321_p7, %s788_s18), 1 }
  0x3a   : > { %s600_s6 = sshll.u32 %s979_s18, 3 }
  0x3b   : > { %337 = vrot.lane.b32.xlu1 %v332_v3, %s803_s10  ;;  %s330_s13 = scalar_lea.vmem %s966_s4, %s600_s6 }
  0x3c   : > { %344 = vrot.lane.b32.xlu0 %v332_v3, %s804_s21 }
  0x40   : > { %353 = vperm.xlu0 %684, %v350_v4  }
  0xa9   : > { %v336_v5 = vpop.permute.xlu1 %335 }
  0xaa   : > { %v343_v6 = vpop.permute.xlu0 %342 }
  0xad   : > { %v338_v7 = vpop.permute.xlu1 %337 }
  0xae   : > { %v345_v8 = vpop.permute.xlu0 %344  ;;  %v340_v10 = vsel %vm339_vm2, %v336_v5, %v338_v7 }
  0xaf   : > { %v347_v9 = vsel %vm346_vm1, %v343_v6, %v345_v8 }
  0xb0   : > { %611 = vmatpush3.msra.mxu0 %v347_v9 }
  0xb1   : > { %612 = vmatprep.subr.mxu0 %v800_v0 }
  0xb2   : > { %613 = vmatpush3.msra.mxu0 %v340_v10 }
  0xb3   : > { %614 = vmatprep.subr.mxu0 %v800_v0 }
  0xb4   : > { %615 = vmatpush3.msra.mxu0 %v331_v2 }
  0xb5   : > { %617 = vmatmul.mubr.msk.f32.vlgmr.msra.gmra.mxu0 %vm356_vm3, %v349_v11 }
  0xbb   : > { %v354_v12 = vpop.permute.xlu0 %353 }
 0x175   : > { %v426_v13 = vpop.f32.mrf.mxu0 }
 0x176   : > { %v427_v14 = vadd.f32 %v426_v13, %v354_v12 }
 0x177   : > { %v618_v15 = vpop.f32.mrf.mxu0 }
 0x178   : > { %430 = vst [vmem:[%s330_s13] sm:$0x3f] %v427_v14 }
 0x179 PF: > { %s20_s20 = sadd.s32 1, %s796_s20   ;;  %s971_s15 = smov %s780_s16 }
 0x17a   : > { %p17_p9 = scmp.ge.s32.totalorder %s20_s20, 4   ;;  %s972_s16 = smov %s784_s17 }
 0x17b   : > { %s973_s17 = smov %s879_s27  ;;  %s974_s18 = smov %s792_s19 }
 0x17c   : > { %s975_s19 = smov %s977_s22  ;;  %19 = sbr.rel (!%p17_p9) target bundleno = 6 (0x6), region = 95 }
 0x181   :  { %462 = vsyncpa [#allocation3], 1 }
 0x182   :  { %464 = vsyncpa [#allocation3 + $0x1], 1 }
 0x183   :  { %465 = vsyncpa [#allocation5], 1 }
 0x184   :  { %467 = vsyncpa [#allocation5 + $0x1], 1 }

</bundles_post_ra>
